<compile_context>
chip_gen: v6e
topology: v6e:2x2x1
jax: 0.10.0
libtpu: 0.0.40
codegen_flags: <defaults>
</compile_context>

<pallas_src>
import functools

import jax
import jax.numpy as jnp
import numpy as np
from jax.experimental import pallas as pl
from jax.experimental.pallas import tpu as pltpu

_NEG_BIG = -1e30  # padded-logit bias; keeps max/exp/logsumexp over real classes exact
_LANE = 128
_BIAS_ROWS = 8    # biases replicated to a full sublane group at pack time


def _decoder_kernel(state_ref, enc_ref, lstm_ref, fc_ref,
                    out_ref, state_out_ref, *,
                    num_steps, num_layers, hidden_size):
    L, H = num_layers, hidden_size
    N = state_ref.shape[0]
    nb = N if N <= _BIAS_ROWS else 1          # pre-broadcast bias rows to use

    enc = enc_ref[...]                        # (N, S, H) -- resident for all steps
    scale = 1.0 / jnp.sqrt(jnp.float32(H))

    # Hoist all weight loads out of the decode loop (DMA'd / read once).
    w_ih, w_hh, b_g = [], [], []
    for l in range(L):
        wl = lstm_ref[l]                      # (2H + 8, 4H)
        w_ih.append(wl[:H, :])
        w_hh.append(wl[H:2 * H, :])
        b_g.append(wl[2 * H:2 * H + nb, :])
    fc_w = fc_ref[:H, :]                      # (H, O_pad)
    fc_b = fc_ref[H:H + nb, :]                # (nb, O_pad)

    state = state_ref[...]                    # (N, 2*L*H): [h_0..h_{L-1}, c_0..c_{L-1}]

    for t in range(num_steps):
        # ---- scaled dot product attention: query = top-layer hidden --------
        q = state[:, (L - 1) * H:L * H]                                # (N, H)
        q3 = q.reshape(N, 1, H)
        scores = jnp.einsum("nqh,nsh->nqs", q3, enc,
                            preferred_element_type=jnp.float32) * scale  # (N,1,S)
        m = jnp.max(scores, axis=-1, keepdims=True)
        p = jnp.exp(scores - m)
        attn = p / jnp.sum(p, axis=-1, keepdims=True)                  # exact divide
        context = jnp.einsum("nqs,nsh->nqh", attn, enc,
                             preferred_element_type=jnp.float32)       # (N,1,H)
        x = context.reshape(N, H)

        # ---- stacked LSTM, one time step (PyTorch gate order: i, f, g, o) --
        new_h, new_c = [], []
        for l in range(L):
            h_prev = state[:, l * H:(l + 1) * H]
            c_prev = state[:, L * H + l * H:L * H + (l + 1) * H]
            # Two independent dots: no concat relayout, h_prev@W_hh is free of
            # the attention dependency chain.
            gates = (jnp.dot(x, w_ih[l], preferred_element_type=jnp.float32)
                     + jnp.dot(h_prev, w_hh[l], preferred_element_type=jnp.float32)
                     + b_g[l])                                          # (N, 4H)
            s = jax.nn.sigmoid(gates)          # single full-tile (128-lane) EUP pass
            i = s[:, 0 * H:1 * H]
            f = s[:, 1 * H:2 * H]
            g = 2.0 * s[:, 2 * H:3 * H] - 1.0  # tanh(x) = 2*sigmoid(2x)-1 (g cols pre-scaled)
            o = s[:, 3 * H:4 * H]
            c_new = f * c_prev + i * g
            h_new = o * jnp.tanh(c_new)
            new_h.append(h_new)
            new_c.append(c_new)
            x = h_new                           # input to next layer

        # One lane-dense state rebuild per step (single relayout, no masked stores).
        state = jnp.concatenate(new_h + new_c, axis=-1)                # (N, 2*L*H)

        # ---- fc + log_softmax (lane-padded to 128 classes) -----------------
        logits = jnp.dot(x, fc_w, preferred_element_type=jnp.float32) + fc_b
        mx = jnp.max(logits, axis=-1, keepdims=True)
        z = logits - mx
        lse = jnp.log(jnp.sum(jnp.exp(z), axis=-1, keepdims=True))
        out_ref[t] = z - lse                                           # (N, O_pad), full-lane store

    state_out_ref[...] = state                                         # single unmasked store


def pack_decoder_params(raw, *, hidden_size, output_size, lane=_LANE):
    """One-time host-side packing of the PyTorch-layout weights."""
    H, O = hidden_size, output_size
    L = raw["w_ih_t"].shape[0]
    o_pad = max(lane, ((O + lane - 1) // lane) * lane)

    # Pre-scale the g-gate (columns 2H:3H) by 2 so tanh becomes 2*sigmoid-1 in-kernel.
    g_scale = jnp.concatenate([jnp.ones((2 * H,), jnp.float32),
                               jnp.full((H,), 2.0, jnp.float32),
                               jnp.ones((H,), jnp.float32)])            # (4H,)
    w_ih = raw["w_ih_t"] * g_scale                                      # (L, H, 4H)
    w_hh = raw["w_hh_t"] * g_scale                                      # (L, H, 4H)
    b = (raw["b_ih"] + raw["b_hh"]) * g_scale                           # (L, 1, 4H)
    b = jnp.broadcast_to(b, (L, _BIAS_ROWS, 4 * H))                     # pre-broadcast sublanes
    lstm_blob = jnp.concatenate([w_ih, w_hh, b], axis=1)                # (L, 2H+8, 4H)

    # FC: lane-pad weight with zeros, bias with -1e30, pre-broadcast bias rows.
    fc_w = jnp.zeros((H, o_pad), jnp.float32).at[:, :O].set(raw["fc_w_t"])
    fc_b = jnp.full((1, o_pad), _NEG_BIG, jnp.float32).at[:, :O].set(raw["fc_b"])
    fc_b = jnp.broadcast_to(fc_b, (_BIAS_ROWS, o_pad))
    fc_blob = jnp.concatenate([fc_w, fc_b], axis=0)                     # (H+8, o_pad)

    return {"lstm_blob": lstm_blob, "fc_blob": fc_blob,
            "output_size": O, "hidden_size": H, "num_layers": L}


@functools.partial(jax.jit, static_argnames=("num_steps", "output_size"))
def _decoder_call(lstm_blob, fc_blob, hidden, cell, encoder_output, *,
                  num_steps, output_size):
    L, N, H = hidden.shape
    o_pad = fc_blob.shape[-1]
    # Pack recurrent state into one lane-dense (N, 2*L*H) blob (fresh buffer,
    # so donating it to the kernel never clobbers the caller's arrays).
    state = jnp.concatenate(
        [hidden.transpose(1, 0, 2).reshape(N, L * H),
         cell.transpose(1, 0, 2).reshape(N, L * H)], axis=-1)

    vmem = functools.partial(pl.BlockSpec, memory_space=pltpu.MemorySpace.VMEM)
    kernel = functools.partial(_decoder_kernel, num_steps=num_steps,
                               num_layers=L, hidden_size=H)
    out, new_state = pl.pallas_call(
        kernel,
        out_shape=(
            jax.ShapeDtypeStruct((num_steps, N, o_pad), jnp.float32),  # lane-dense log-probs
            jax.ShapeDtypeStruct((N, 2 * L * H), jnp.float32),         # lane-dense state
        ),
        in_specs=[vmem()] * 4,
        out_specs=(vmem(), vmem()),
        input_output_aliases={0: 1},   # state blob updated in place
    )(state, encoder_output, lstm_blob, fc_blob)

    h_new = new_state[:, :L * H].reshape(N, L, H).transpose(1, 0, 2)
    c_new = new_state[:, L * H:].reshape(N, L, H).transpose(1, 0, 2)
    return out[:, :, :output_size], h_new, c_new


def decoder_forward(packed, hidden, cell, encoder_output):
    """Single step — exact equivalent of Decoder.forward (PyTorch layout)."""
    out, h_new, c_new = _decoder_call(
        packed["lstm_blob"], packed["fc_blob"], hidden, cell, encoder_output,
        num_steps=1, output_size=packed["output_size"])
    return out[0][:, None, :], h_new, c_new       # (N, 1, O)


def decoder_decode(packed, hidden, cell, encoder_output, num_steps):
    """num_steps autoregressive decoder steps fused into one pallas_call."""
    return _decoder_call(
        packed["lstm_blob"], packed["fc_blob"], hidden, cell, encoder_output,
        num_steps=num_steps, output_size=packed["output_size"])


def decoder_reference(raw, hidden, cell, enc):
    """Pure-JAX reference matching the PyTorch forward."""
    L, N, H = hidden.shape
    q = hidden[-1]                                            # (N, H)
    scores = jnp.einsum("nh,nsh->ns", q, enc) / jnp.sqrt(jnp.float32(H))
    attn = jax.nn.softmax(scores, axis=-1)
    x = jnp.einsum("ns,nsh->nh", attn, enc)
    new_h, new_c = [], []
    for l in range(L):
        gates = (x @ raw["w_ih_t"][l] + hidden[l] @ raw["w_hh_t"][l]
                 + raw["b_ih"][l] + raw["b_hh"][l])
        i, f, g, o = jnp.split(gates, 4, axis=-1)
        i, f, o = jax.nn.sigmoid(i), jax.nn.sigmoid(f), jax.nn.sigmoid(o)
        g = jnp.tanh(g)
        c = f * cell[l] + i * g
        h = o * jnp.tanh(c)
        new_h.append(h)
        new_c.append(c)
        x = h
    logits = x @ raw["fc_w_t"] + raw["fc_b"]
    out = jax.nn.log_softmax(logits, axis=-1)[:, None, :]
    return out, jnp.stack(new_h), jnp.stack(new_c)


if __name__ == "__main__":
    # Shapes consistent with the module: output_size=27, hidden_size=32,
    # num_layers=2, batch N=2, encoder sequence S=8.
    N, S, H, O, L = 2, 8, 32, 27, 2
    T = 5  # fused multi-step decode length
    key = jax.random.PRNGKey(0)
    ks = jax.random.split(key, 9)
    bound = 1.0 / np.sqrt(H)

    raw = {
        # LSTM weights pre-transposed: (L, H, 4H)  (PyTorch stores (4H, H))
        "w_ih_t": jax.random.uniform(ks[0], (L, H, 4 * H), jnp.float32, -bound, bound),
        "w_hh_t": jax.random.uniform(ks[1], (L, H, 4 * H), jnp.float32, -bound, bound),
        "b_ih":   jax.random.uniform(ks[2], (L, 1, 4 * H), jnp.float32, -bound, bound),
        "b_hh":   jax.random.uniform(ks[3], (L, 1, 4 * H), jnp.float32, -bound, bound),
        # fc weight pre-transposed: (H, O)  (PyTorch stores (O, H))
        "fc_w_t": jax.random.uniform(ks[4], (H, O), jnp.float32, -bound, bound),
        "fc_b":   jax.random.uniform(ks[5], (1, O), jnp.float32, -bound, bound),
    }
    packed = pack_decoder_params(raw, hidden_size=H, output_size=O)

    hidden = jax.random.normal(ks[6], (L, N, H), jnp.float32)
    cell = jax.random.normal(ks[7], (L, N, H), jnp.float32)
    encoder_output = jax.random.normal(ks[8], (N, S, H), jnp.float32)

    # ---- single-step: matches Decoder.forward exactly ----------------------
    ro, rh, rc = decoder_reference(raw, hidden, cell, encoder_output)
    out, h_new, c_new = decoder_forward(packed, hidden, cell, encoder_output)
    jax.block_until_ready((out, h_new, c_new))
    assert out.shape == (N, 1, O) and h_new.shape == (L, N, H) and c_new.shape == (L, N, H)
    assert jnp.allclose(out, ro, atol=2e-3, rtol=2e-3)
    assert jnp.allclose(h_new, rh, atol=2e-3, rtol=2e-3)
    assert jnp.allclose(c_new, rc, atol=2e-3, rtol=2e-3)

    # ---- fused multi-step decode (T repeated module calls in one kernel) ---
    mo, mh, mc = decoder_decode(packed, hidden, cell, encoder_output, T)
    jax.block_until_ready((mo, mh, mc))
    ref_outs, rhid, rcel = [], hidden, cell
    for _ in range(T):
        r, rhid, rcel = decoder_reference(raw, rhid, rcel, encoder_output)
        ref_outs.append(r[:, 0, :])
    ref_outs = jnp.stack(ref_outs)                 # (T, N, O)
    assert mo.shape == (T, N, O)
    assert jnp.allclose(mo, ref_outs, atol=2e-3, rtol=2e-3)
    assert jnp.allclose(mh, rhid, atol=2e-3, rtol=2e-3)
    assert jnp.allclose(mc, rcel, atol=2e-3, rtol=2e-3)

    print("KERNEL_OK")
</pallas_src>

<mosaic_0001>
module attributes {stable_mosaic.version = 11 : i64} {
  func.func @_decoder_kernel(%arg0: memref<2x128xf32, #tpu.memory_space<vmem>>, %arg1: memref<2x8x32xf32, #tpu.memory_space<vmem>>, %arg2: memref<2x72x128xf32, #tpu.memory_space<vmem>>, %arg3: memref<40x128xf32, #tpu.memory_space<vmem>>, %arg4: memref<1x2x128xf32, #tpu.memory_space<vmem>>, %arg5: memref<2x128xf32, #tpu.memory_space<vmem>>) attributes {dimension_semantics = [], scalar_prefetch = 0 : i64, scratch_operands = 0 : i64, tpu.core_type = #tpu.core_type<tc>} {
    %c0 = arith.constant 0 : index
    %c0_0 = arith.constant 0 : index
    %c0_1 = arith.constant 0 : index
    %0 = vector.load %arg1[%c0, %c0_0, %c0_1] : memref<2x8x32xf32, #tpu.memory_space<vmem>>, vector<2x8x32xf32>
    %cst = arith.constant 3.200000e+01 : f32
    %1 = math.sqrt %cst : f32
    %cst_2 = arith.constant 1.000000e+00 : f32
    %2 = arith.divf %cst_2, %1 : f32
    %c0_3 = arith.constant 0 : index
    %c0_4 = arith.constant 0 : index
    %c0_5 = arith.constant 0 : index
    %3 = vector.load %arg2[%c0_3, %c0_4, %c0_5] : memref<2x72x128xf32, #tpu.memory_space<vmem>>, vector<1x72x128xf32>
    %4 = vector.shape_cast %3 : vector<1x72x128xf32> to vector<72x128xf32>
    %5 = vector.extract_strided_slice %4 {offsets = [0, 0], sizes = [32, 128], strides = [1, 1]} : vector<72x128xf32> to vector<32x128xf32>
    %6 = vector.extract_strided_slice %4 {offsets = [32, 0], sizes = [32, 128], strides = [1, 1]} : vector<72x128xf32> to vector<32x128xf32>
    %7 = vector.extract_strided_slice %4 {offsets = [64, 0], sizes = [2, 128], strides = [1, 1]} : vector<72x128xf32> to vector<2x128xf32>
    %c1 = arith.constant 1 : index
    %c0_6 = arith.constant 0 : index
    %c0_7 = arith.constant 0 : index
    %8 = vector.load %arg2[%c1, %c0_6, %c0_7] : memref<2x72x128xf32, #tpu.memory_space<vmem>>, vector<1x72x128xf32>
    %9 = vector.shape_cast %8 : vector<1x72x128xf32> to vector<72x128xf32>
    %10 = vector.extract_strided_slice %9 {offsets = [0, 0], sizes = [32, 128], strides = [1, 1]} : vector<72x128xf32> to vector<32x128xf32>
    %11 = vector.extract_strided_slice %9 {offsets = [32, 0], sizes = [32, 128], strides = [1, 1]} : vector<72x128xf32> to vector<32x128xf32>
    %12 = vector.extract_strided_slice %9 {offsets = [64, 0], sizes = [2, 128], strides = [1, 1]} : vector<72x128xf32> to vector<2x128xf32>
    %c0_8 = arith.constant 0 : index
    %c0_9 = arith.constant 0 : index
    %13 = vector.load %arg3[%c0_8, %c0_9] : memref<40x128xf32, #tpu.memory_space<vmem>>, vector<32x128xf32>
    %c32 = arith.constant 32 : index
    %c0_10 = arith.constant 0 : index
    %14 = vector.load %arg3[%c32, %c0_10] : memref<40x128xf32, #tpu.memory_space<vmem>>, vector<2x128xf32>
    %c0_11 = arith.constant 0 : index
    %c0_12 = arith.constant 0 : index
    %15 = vector.load %arg0[%c0_11, %c0_12] : memref<2x128xf32, #tpu.memory_space<vmem>>, vector<2x128xf32>
    %16 = vector.extract_strided_slice %15 {offsets = [0, 32], sizes = [2, 32], strides = [1, 1]} : vector<2x128xf32> to vector<2x32xf32>
    %17 = vector.shape_cast %16 : vector<2x32xf32> to vector<2x1x32xf32>
    "tpu.trace_start"() <{level = 10 : i32, message = "nqh,nsh->nqs"}> : () -> ()
    %cst_13 = arith.constant dense<0.000000e+00> : vector<2x1x8xf32>
    %18 = tpu.matmul %17, %0, %cst_13 {dimension_numbers = #tpu.dot_dimension_numbers<[2], [2], [1], [1], [0, 0, 0, 1, 1, 1], [0], [0]>} : vector<2x1x32xf32>, vector<2x8x32xf32>, vector<2x1x8xf32> -> vector<2x1x8xf32>
    "tpu.trace_stop"() : () -> ()
    %19 = vector.broadcast %2 : f32 to vector<2x1x8xf32>
    %20 = arith.mulf %18, %19 : vector<2x1x8xf32>
    %cst_14 = arith.constant dense<0xFF800000> : vector<2x1xf32>
    %21 = vector.multi_reduction <maximumf>, %20, %cst_14 [2] : vector<2x1x8xf32> to vector<2x1xf32>
    %22 = vector.shape_cast %21 : vector<2x1xf32> to vector<2x1x1xf32>
    %23 = vector.broadcast %22 : vector<2x1x1xf32> to vector<2x1x8xf32>
    %24 = arith.subf %20, %23 : vector<2x1x8xf32>
    %25 = math.exp %24 : vector<2x1x8xf32>
    %cst_15 = arith.constant dense<0.000000e+00> : vector<2x1xf32>
    %26 = vector.multi_reduction <add>, %25, %cst_15 [2] : vector<2x1x8xf32> to vector<2x1xf32>
    %27 = vector.shape_cast %26 : vector<2x1xf32> to vector<2x1x1xf32>
    %28 = vector.broadcast %27 : vector<2x1x1xf32> to vector<2x1x8xf32>
    %29 = arith.divf %25, %28 : vector<2x1x8xf32>
    "tpu.trace_start"() <{level = 10 : i32, message = "nqs,nsh->nqh"}> : () -> ()
    %cst_16 = arith.constant dense<0.000000e+00> : vector<2x1x32xf32>
    %30 = tpu.matmul %29, %0, %cst_16 {dimension_numbers = #tpu.dot_dimension_numbers<[2], [1], [1], [2], [0, 0, 0, 1, 1, 2], [0], [0]>} : vector<2x1x8xf32>, vector<2x8x32xf32>, vector<2x1x32xf32> -> vector<2x1x32xf32>
    "tpu.trace_stop"() : () -> ()
    %31 = vector.shape_cast %30 : vector<2x1x32xf32> to vector<2x32xf32>
    %32 = vector.extract_strided_slice %15 {offsets = [0, 0], sizes = [2, 32], strides = [1, 1]} : vector<2x128xf32> to vector<2x32xf32>
    %33 = vector.extract_strided_slice %15 {offsets = [0, 64], sizes = [2, 32], strides = [1, 1]} : vector<2x128xf32> to vector<2x32xf32>
    %cst_17 = arith.constant dense<0.000000e+00> : vector<2x128xf32>
    %34 = tpu.matmul %31, %5, %cst_17 {dimension_numbers = #tpu.dot_dimension_numbers<[1], [0], [0], [1], [0, 0, 1, 1], [], []>} : vector<2x32xf32>, vector<32x128xf32>, vector<2x128xf32> -> vector<2x128xf32>
    %cst_18 = arith.constant dense<0.000000e+00> : vector<2x128xf32>
    %35 = tpu.matmul %32, %6, %cst_18 {dimension_numbers = #tpu.dot_dimension_numbers<[1], [0], [0], [1], [0, 0, 1, 1], [], []>} : vector<2x32xf32>, vector<32x128xf32>, vector<2x128xf32> -> vector<2x128xf32>
    %36 = arith.addf %34, %35 : vector<2x128xf32>
    %37 = arith.addf %36, %7 : vector<2x128xf32>
    %38 = arith.negf %37 : vector<2x128xf32>
    %39 = math.exp %38 : vector<2x128xf32>
    %cst_19 = arith.constant 1.000000e+00 : f32
    %40 = vector.broadcast %cst_19 : f32 to vector<2x128xf32>
    %41 = arith.addf %40, %39 : vector<2x128xf32>
    %42 = arith.divf %40, %41 : vector<2x128xf32>
    %43 = vector.extract_strided_slice %42 {offsets = [0, 0], sizes = [2, 32], strides = [1, 1]} : vector<2x128xf32> to vector<2x32xf32>
    %44 = vector.extract_strided_slice %42 {offsets = [0, 32], sizes = [2, 32], strides = [1, 1]} : vector<2x128xf32> to vector<2x32xf32>
    %45 = vector.extract_strided_slice %42 {offsets = [0, 64], sizes = [2, 32], strides = [1, 1]} : vector<2x128xf32> to vector<2x32xf32>
    %cst_20 = arith.constant 2.000000e+00 : f32
    %46 = vector.broadcast %cst_20 : f32 to vector<2x32xf32>
    %47 = arith.mulf %46, %45 : vector<2x32xf32>
    %cst_21 = arith.constant 1.000000e+00 : f32
    %48 = vector.broadcast %cst_21 : f32 to vector<2x32xf32>
    %49 = arith.subf %47, %48 : vector<2x32xf32>
    %50 = vector.extract_strided_slice %42 {offsets = [0, 96], sizes = [2, 32], strides = [1, 1]} : vector<2x128xf32> to vector<2x32xf32>
    %51 = arith.mulf %44, %33 : vector<2x32xf32>
    %52 = arith.mulf %43, %49 : vector<2x32xf32>
    %53 = arith.addf %51, %52 : vector<2x32xf32>
    %54 = math.tanh %53 : vector<2x32xf32>
    %55 = arith.mulf %50, %54 : vector<2x32xf32>
    %56 = vector.extract_strided_slice %15 {offsets = [0, 32], sizes = [2, 32], strides = [1, 1]} : vector<2x128xf32> to vector<2x32xf32>
    %57 = vector.extract_strided_slice %15 {offsets = [0, 96], sizes = [2, 32], strides = [1, 1]} : vector<2x128xf32> to vector<2x32xf32>
    %cst_22 = arith.constant dense<0.000000e+00> : vector<2x128xf32>
    %58 = tpu.matmul %55, %10, %cst_22 {dimension_numbers = #tpu.dot_dimension_numbers<[1], [0], [0], [1], [0, 0, 1, 1], [], []>} : vector<2x32xf32>, vector<32x128xf32>, vector<2x128xf32> -> vector<2x128xf32>
    %cst_23 = arith.constant dense<0.000000e+00> : vector<2x128xf32>
    %59 = tpu.matmul %56, %11, %cst_23 {dimension_numbers = #tpu.dot_dimension_numbers<[1], [0], [0], [1], [0, 0, 1, 1], [], []>} : vector<2x32xf32>, vector<32x128xf32>, vector<2x128xf32> -> vector<2x128xf32>
    %60 = arith.addf %58, %59 : vector<2x128xf32>
    %61 = arith.addf %60, %12 : vector<2x128xf32>
    %62 = arith.negf %61 : vector<2x128xf32>
    %63 = math.exp %62 : vector<2x128xf32>
    %cst_24 = arith.constant 1.000000e+00 : f32
    %64 = vector.broadcast %cst_24 : f32 to vector<2x128xf32>
    %65 = arith.addf %64, %63 : vector<2x128xf32>
    %66 = arith.divf %64, %65 : vector<2x128xf32>
    %67 = vector.extract_strided_slice %66 {offsets = [0, 0], sizes = [2, 32], strides = [1, 1]} : vector<2x128xf32> to vector<2x32xf32>
    %68 = vector.extract_strided_slice %66 {offsets = [0, 32], sizes = [2, 32], strides = [1, 1]} : vector<2x128xf32> to vector<2x32xf32>
    %69 = vector.extract_strided_slice %66 {offsets = [0, 64], sizes = [2, 32], strides = [1, 1]} : vector<2x128xf32> to vector<2x32xf32>
    %cst_25 = arith.constant 2.000000e+00 : f32
    %70 = vector.broadcast %cst_25 : f32 to vector<2x32xf32>
    %71 = arith.mulf %70, %69 : vector<2x32xf32>
    %cst_26 = arith.constant 1.000000e+00 : f32
    %72 = vector.broadcast %cst_26 : f32 to vector<2x32xf32>
    %73 = arith.subf %71, %72 : vector<2x32xf32>
    %74 = vector.extract_strided_slice %66 {offsets = [0, 96], sizes = [2, 32], strides = [1, 1]} : vector<2x128xf32> to vector<2x32xf32>
    %75 = arith.mulf %68, %57 : vector<2x32xf32>
    %76 = arith.mulf %67, %73 : vector<2x32xf32>
    %77 = arith.addf %75, %76 : vector<2x32xf32>
    %78 = math.tanh %77 : vector<2x32xf32>
    %79 = arith.mulf %74, %78 : vector<2x32xf32>
    %80 = tpu.concatenate %55, %79, %53, %77 in 1 : vector<2x32xf32>, vector<2x32xf32>, vector<2x32xf32>, vector<2x32xf32> -> vector<2x128xf32>
    %cst_27 = arith.constant dense<0.000000e+00> : vector<2x128xf32>
    %81 = tpu.matmul %79, %13, %cst_27 {dimension_numbers = #tpu.dot_dimension_numbers<[1], [0], [0], [1], [0, 0, 1, 1], [], []>} : vector<2x32xf32>, vector<32x128xf32>, vector<2x128xf32> -> vector<2x128xf32>
    %82 = arith.addf %81, %14 : vector<2x128xf32>
    %cst_28 = arith.constant dense<0xFF800000> : vector<2xf32>
    %83 = vector.multi_reduction <maximumf>, %82, %cst_28 [1] : vector<2x128xf32> to vector<2xf32>
    %84 = vector.shape_cast %83 : vector<2xf32> to vector<2x1xf32>
    %85 = vector.broadcast %84 : vector<2x1xf32> to vector<2x128xf32>
    %86 = arith.subf %82, %85 : vector<2x128xf32>
    %87 = math.exp %86 : vector<2x128xf32>
    %cst_29 = arith.constant dense<0.000000e+00> : vector<2xf32>
    %88 = vector.multi_reduction <add>, %87, %cst_29 [1] : vector<2x128xf32> to vector<2xf32>
    %89 = vector.shape_cast %88 : vector<2xf32> to vector<2x1xf32>
    %90 = math.log %89 : vector<2x1xf32>
    %91 = vector.broadcast %90 : vector<2x1xf32> to vector<2x128xf32>
    %92 = arith.subf %86, %91 : vector<2x128xf32>
    %c0_30 = arith.constant 0 : index
    %c0_31 = arith.constant 0 : index
    %c0_32 = arith.constant 0 : index
    %93 = vector.load %arg4[%c0_30, %c0_31, %c0_32] : memref<1x2x128xf32, #tpu.memory_space<vmem>>, vector<1x2x128xf32>
    %94 = vector.shape_cast %93 : vector<1x2x128xf32> to vector<2x128xf32>
    %95 = vector.shape_cast %92 : vector<2x128xf32> to vector<1x2x128xf32>
    tpu.vector_store %arg4[%c0_30, %c0_31, %c0_32], %95 {strides = array<i32>} : memref<1x2x128xf32, #tpu.memory_space<vmem>>, vector<1x2x128xf32>,
    %c0_33 = arith.constant 0 : index
    %c0_34 = arith.constant 0 : index
    %96 = vector.load %arg5[%c0_33, %c0_34] : memref<2x128xf32, #tpu.memory_space<vmem>>, vector<2x128xf32>
    tpu.vector_store %arg5[%c0_33, %c0_34], %80 {strides = array<i32>} : memref<2x128xf32, #tpu.memory_space<vmem>>, vector<2x128xf32>,
    return
  }
}

</mosaic_0001>

<bundles_post_ra>
// kernel: _decoder_call.1
= control target key start
LH: loop header
LB: loop body
LE: loop exit
PB: predicated region body
PF: predicated region fallthrough
CT: control target
= control target key end

     0   :  { %11 = vsyncpa [#allocation3], 0  ;;  %s1285_s0 = inlined_call_operand.vmem [shape: f32[2,128], index: 0, kind: input, shape index: {}, may-alias: {0,5}]   ;;  %s1286_s1 = inlined_call_operand.vmem [shape: f32[2,8,32], index: 1, kind: input, shape index: {}]   ;;  %s1287_s2 = inlined_call_operand.hbm [shape: f32[2,72,128], index: 2, kind: input, shape index: {}]   ;;  %s1288_s3 = inlined_call_operand.hbm [shape: f32[40,128], index: 3, kind: input, shape index: {}]   ;;  %s1289_s4 = inlined_call_operand.hbm [shape: f32[1,2,128], index: 4, kind: output, shape index: {0}]   ;;  %s1290_s5 = inlined_call_operand.vmem [shape: f32[2,128], index: 5, kind: output, shape index: {1}, may-alias: {0,5}]  }
   0x1   :  { %12 = vsyncpa [#allocation6], 0 }
   0x2   :  { %13 = vsyncpa [#allocation4], 0  ;;  %s1138_s18 = smov [#allocation2]  }
   0x3   :  { %s23_s19 = sshll.u32 %s1138_s18, 4  ;;  %s24_s19 = int_to_ptr.vmem [resolvable:$true] %s23_s19 }
   0x4   :  { %s1080_s20 = scalar_lea.vmem %s24_s19, 2304  ;;  %p1085_p1 = scmp.lt.s32.totalorder %s24_s19, %s24_s19 }
   0x5   :  { %p1081_p0 = scmp.ne.s32.totalorder %s24_s19, %s1080_s20  ;;  %p1086_p2 = scmp.lt.s32.totalorder %s1080_s20, %s1080_s20 }
   0x7   :  { %p1087_p3 = por %p1086_p2, %p1085_p1 }
   0x9   :  { %p1088_p4 = pnand %p1087_p3, %p1081_p0 }
   0xb   :  { %1091 = shalt.err (!%p1088_p4)
}
   0xc   :  { %s1139_s21 = smov 128   ;;  %s1140_s22 = smov 8  }
   0xd   :  { %29 = dma.hbm_to_vmem [thread:$0]  %s1287_s2, 2304, %s24_s19, [#allocation3], %s1139_s21, %s1139_s21, %s1140_s22  }
   0xe   :  { %s1141_s25 = smov [#allocation5]  }
   0xf   :  { %s35_s26 = sshll.u32 %s1141_s25, 4  ;;  %s36_s26 = int_to_ptr.vmem [resolvable:$true] %s35_s26 }
  0x10   :  { %s1100_s27 = scalar_lea.vmem %s36_s26, 640  ;;  %p1105_p6 = scmp.lt.s32.totalorder %s36_s26, %s36_s26 }
  0x11   :  { %p1101_p5 = scmp.ne.s32.totalorder %s36_s26, %s1100_s27  ;;  %p1106_p7 = scmp.lt.s32.totalorder %s1100_s27, %s1100_s27 }
  0x13   :  { %p1107_p8 = por %p1106_p7, %p1105_p6 }
  0x15   :  { %p1108_p9 = pnand %p1107_p8, %p1101_p5 }
  0x17   :  { %1111 = shalt.err (!%p1108_p9)
}
  0x18   :  { %41 = dma.hbm_to_vmem [thread:$0]  %s1288_s3, 640, %s36_s26, [#allocation6], %s1139_s21, %s1139_s21, %s1140_s22  }
  0x19   :  { %1132 = dma.done.wait [#allocation3], 2304  }
  0x1a   :  { %1133 = vsyncadd [#allocation3], 4294964992 }
  0x1b   :  { %1134 = dma.done.wait [#allocation6], 640  }
  0x1c   :  { %1135 = vsyncadd [#allocation6], 4294966656  ;;  %v79_v0 = vlaneseq  ;;  %v1142_v1 = vmov 1966171168   ;;  %v1143_v3 = vmov 0.0   ;;  %vm1144_vm0 = vmmov 0  }
  0x1d   :  { %v77_v2 = vunpack.c.l.s4 %v1142_v1  ;;  %962 = vmatprep.subr.mxu1 %v1143_v3  ;;  %972 = vmatprep.subr.mxu0 %v1143_v3  ;;  %vm104_vm1 = vcmask 261120   ;;  %v1194_v7 = vld [vmem:[%s1285_s0] sm:$0x3]  ;;  %s1145_s0 = smov 96   ;;  %v49_v16 = vld [vmem:[%s1286_s1 + $0x8] sm:$0xff]  ;;  %vm263_vm2 = vcmask 57344  }
  0x1e   :  { %v80_v4 = vshrl.u32 %v79_v0, 7  ;;  %964 = vmatprep.mubr.msk.f32.mxu1 %vm1144_vm0, %v1143_v3  ;;  %974 = vmatprep.mubr.msk.f32.mxu0 %vm1144_vm0, %v1143_v3  ;;  %v48_v8 = vld [vmem:[%s1286_s1] sm:$0xff]  ;;  %vm286_vm3 = vcmask 64512   ;;  %v53_v41 = vld [vmem:[#allocation2 + $0x18] sm:$0xff]  ;;  %v56_v45 = vld [vmem:[#allocation2 + $0x30] sm:$0xff]  ;;  %vm508_vm4 = vcmask 1041409  }
  0x1f   :  { %v78_v5 = vunpack.c.0.s8 %v77_v2  ;;  %963 = vmatpush3.xpose.msk.msra.mxu1 %vm104_vm1, %v48_v8  ;;  %973 = vmatpush3.msra.mxu0 %v48_v8  ;;  %v57_v44 = vld [vmem:[#allocation2 + $0x38] sm:$0xff]  ;;  %v55_v46 = vld [vmem:[#allocation2 + $0x28] sm:$0xff]  ;;  %v52_v47 = vld [vmem:[#allocation2 + $0x10] sm:$0xff]  ;;  %s1146_s1 = smov 64   ;;  %s1147_s9 = smov 32   ;;  %vm879_vm5 = vcmask 1041408  }
  0x20   :  { %v100_v10 = vsub.s32 0, %v80_v4  ;;  %967 = vmatprep.subr.mxu1 %v1143_v3  ;;  %982 = vmatprep.subr.mxu0 %v1143_v3  ;;  %v54_v48 = vld [vmem:[#allocation2 + $0x20] sm:$0xff]  ;;  %v51_v49 = vld [vmem:[#allocation2 + $0x8] sm:$0xff]  ;;  %vm801_vm6 = vcmask 523264   ;;  %vm803_vm7 = vcmask 785408   ;;  %s1148_s12 = smov [#allocation7]  }
  0x21   :  { %v81_v6 = vsub.s32 %v78_v5, %v80_v4  ;;  %v50_v50 = vld [vmem:[#allocation2] sm:$0xff]  ;;  %v66_v5 = vld [vmem:[#allocation2 + $0x78] sm:$0xff]  ;;  %s900_s13 = sshll.u32 %s1148_s12, 4  ;;  %s901_s13 = int_to_ptr.vmem [resolvable:$true] %s900_s13 }
  0x22   :  { %v58_v59 = vld [vmem:[#allocation2 + $0x40] sm:$0xff]  ;;  %s1112_s14 = scalar_lea.vmem %s901_s13, 32  ;;  %p1117_p11 = scmp.lt.s32.totalorder %s901_s13, %s901_s13 }
  0x23   :  { %v82_v9 = vrot.slane %v1194_v7, %v81_v6  ;;  %v67_v4 = vld [vmem:[#allocation2 + $0x80] sm:$0xff]  ;;  %p1113_p10 = scmp.ne.s32.totalorder %s901_s13, %s1112_s14  ;;  %p1118_p12 = scmp.lt.s32.totalorder %s1112_s14, %s1112_s14 }
  0x25   :  { %v90_v11 = vrot.slane %v82_v9, %v81_v6  ;;  %v83_v12 = vcombine.high %v82_v9, %v82_v9  ;;  %v64_v9 = vld [vmem:[#allocation2 + $0x68] sm:$0xff]  ;;  %p1119_p13 = por %p1118_p12, %p1117_p11 }
  0x27   :  { %v101_v13 = vrot.slane %v90_v11, %v100_v10  ;;  %v97_v14 = vrot.slane %v83_v12, %v81_v6  ;;  %v65_v6 = vld [vmem:[#allocation2 + $0x70] sm:$0xff]  ;;  %p1120_p0 = pnand %p1119_p13, %p1113_p10 }
  0x29   :  { %102 = vrot.lane.b32.xlu0 %v101_v13, %s1145_s0  ;;  %v183_v15 = vrot.slane %v97_v14, %v100_v10 }
  0x2d   :  { %184 = vrot.lane.b32.xlu0 %v183_v15, %s1145_s0 }
  0x9b   :  { %v103_v17 = vpop.permute.xlu0 %102 }
  0x9c   :  { %965 = vmatmul.mubr.msk.f32.vlgmr.msra.gmra.mxu1 %vm104_vm1, %v103_v17 }
  0x9d   :  { %968 = vmatpush3.xpose.msk.msra.mxu1 %vm104_vm1, %v49_v16  ;;  %969 = vmatprep.mubr.msk.f32.mxu1 %vm1144_vm0, %v1143_v3 }
  0x9e   :  { %977 = vmatprep.subr.mxu1 %v1143_v3 }
  0x9f   :  { %v185_v18 = vpop.permute.xlu0 %184 }
  0xa0   :  { %970 = vmatmul.mubr.msk.f32.vlgmr.msra.gmra.mxu1 %vm104_vm1, %v185_v18  ;;  %v63_v18 = vld [vmem:[#allocation2 + $0x60] sm:$0xff] }
  0xa1   :  { %978 = vmatpush3.msra.mxu1 %v49_v16  ;;  %979 = vmatprep.mubr.msk.f32.mxu1 %vm1144_vm0, %v1143_v3 }
  0xa2   :  { %993 = vmatprep.subr.mxu1 %v1143_v3 }
 0x15c   :  { %v176_v19 = vpop.f32.mrf.mxu1 }
 0x15d   :  { %v261_v24 = vmul.f32 0.17677669, %v176_v19  ;;  %v62_v19 = vld [vmem:[#allocation2 + $0x58] sm:$0xff] }
 0x15e   :  { %v966_v20 = vpop.f32.mrf.mxu1 }
 0x15f   :  { %v264_v26 = vsel %vm263_vm2, %v261_v24, -inf  ;;  %v61_v20 = vld [vmem:[#allocation2 + $0x50] sm:$0xff] }
 0x160   :  { %v257_v21 = vpop.f32.mrf.mxu1 }
 0x161   :  { %v262_v22 = vmul.f32 0.17677669, %v257_v21  ;;  %v60_v21 = vld [vmem:[#allocation2 + $0x48] sm:$0xff] }
 0x162   :  { %v971_v23 = vpop.f32.mrf.mxu1 }
 0x163   :  { %v267_v25 = vsel %vm263_vm2, %v262_v22, -inf }
 0x164   :  { %268 = vmax.xlane.f32.xlu1 %v267_v25 }
 0x168   :  { %265 = vmax.xlane.f32.xlu1 %v264_v26 }
 0x1ed   :  { %v269_v27 = vpop.xlane.xlu1 %268 }
 0x1ee   :  { %v271_v28 = vsub.f32 %v262_v22, %v269_v27 }
 0x1f0   :  { %v274_v29 = vmul.f32 1.442695, %v271_v28  ;;  %v68_v28 = vld [vmem:[#allocation2 + $0x88] sm:$0xff] }
 0x1f1   :  { %v266_v30 = vpop.xlane.xlu1 %265 }
 0x1f2   :  { %1048 = vpow2.f32 %v274_v29  ;;  %v270_v31 = vsub.f32 %v261_v24, %v266_v30 }
 0x1f4   :  { %v272_v32 = vmul.f32 1.442695, %v270_v31 }
 0x1f6   :  { %1050 = vpow2.f32 %v272_v32 }
 0x1ff   :  { %v1049_v33 = vpop.eup %1048 }
 0x200   :  { %v279_v34 = vsel %vm263_vm2, %v1049_v33, 0.0 }
 0x201   :  { %280 = vadd.xlane.f32.xlu0 %v279_v34 }
 0x203   :  { %v1051_v35 = vpop.eup %1050 }
 0x204   :  { %v276_v36 = vsel %vm263_vm2, %v1051_v35, 0.0 }
 0x205   :  { %277 = vadd.xlane.f32.xlu1 %v276_v36 }
 0x28a   :  { %v281_v37 = vpop.xlane.xlu0 %280 }
 0x28b   :  { %1052 = vrcp.f32 %v281_v37 }
 0x28e   :  { %v278_v38 = vpop.xlane.xlu1 %277 }
 0x28f   :  { %1054 = vrcp.f32 %v278_v38 }
 0x298   :  { %v1053_v39 = vpop.eup %1052 }
 0x299   :  { %v285_v40 = vmul.f32 %v1053_v39, %v1049_v33 }
 0x29b   :  { %980 = vmatmul.mubr.msk.f32.vlgmr.msra.gmra.mxu1 %vm286_vm3, %v285_v40 }
 0x29c   :  { %v1055_v42 = vpop.eup %1054  ;;  %994 = vmatpush3.msra.mxu1 %v53_v41  ;;  %1001 = vmatprep.mubr.msk.f32.mxu1 %vm1144_vm0, %v1143_v3 }
 0x29d   :  { %v283_v43 = vmul.f32 %v1055_v42, %v1051_v35  ;;  %995 = vmatprep.subr.mxu1 %v1143_v3 }
 0x29e   :  { %996 = vmatpush3.msra.mxu1 %v52_v47  ;;  %v70_v47 = vld [vmem:[#allocation5 + $0x8] sm:$0xff] }
 0x29f   :  { %975 = vmatmul.mubr.msk.f32.vlgmr.msra.gmra.mxu0 %vm286_vm3, %v283_v43  ;;  %997 = vmatprep.subr.mxu1 %v1143_v3 }
 0x2a0   :  { %983 = vmatpush3.msra.mxu0 %v57_v44  ;;  %990 = vmatprep.mubr.msk.f32.mxu0 %vm1144_vm0, %v1143_v3 }
 0x2a1   :  { %984 = vmatprep.subr.mxu0 %v1143_v3  ;;  %998 = vmatpush3.msra.mxu1 %v51_v49 }
 0x2a2   :  { %985 = vmatpush3.msra.mxu0 %v56_v45  ;;  %999 = vmatprep.subr.mxu1 %v1143_v3  ;;  %v72_v45 = vld [vmem:[#allocation5 + $0x18] sm:$0xff] }
 0x2a3   :  { %986 = vmatprep.subr.mxu0 %v1143_v3  ;;  %1000 = vmatpush3.msra.mxu1 %v50_v50 }
 0x2a4   :  { %987 = vmatpush3.msra.mxu0 %v55_v46  ;;  %1015 = vmatprep.subr.mxu1 %v1143_v3  ;;  %v71_v46 = vld [vmem:[#allocation5 + $0x10] sm:$0xff] }
 0x2a5   :  { %988 = vmatprep.subr.mxu0 %v1143_v3 }
 0x2a6   :  { %989 = vmatpush3.msra.mxu0 %v54_v48  ;;  %v69_v48 = vld [vmem:[#allocation5] sm:$0xff] }
 0x2a7   :  { %991 = vmatmul.mubr.msk.f32.vlgmr.msra.gmra.mxu0 %vm104_vm1, %v1194_v7  ;;  %1004 = vmatprep.subr.mxu0 %v1143_v3 }
 0x2a8   :  { %1012 = vmatprep.mubr.msk.f32.mxu0 %vm1144_vm0, %v1143_v3  ;;  %1005 = vmatpush3.msra.mxu0 %v67_v4 }
 0x2a9   :  { %1006 = vmatprep.subr.mxu0 %v1143_v3 }
 0x2aa   :  { %1007 = vmatpush3.msra.mxu0 %v66_v5 }
 0x2ab   :  { %1008 = vmatprep.subr.mxu0 %v1143_v3 }
 0x2ac   :  { %1009 = vmatpush3.msra.mxu0 %v65_v6 }
 0x2ad   :  { %1010 = vmatprep.subr.mxu0 %v1143_v3 }
 0x2ae   :  { %1011 = vmatpush3.msra.mxu0 %v64_v9 }
 0x2af   :  { %1026 = vmatprep.subr.mxu0 %v1143_v3 }
 0x35b   :  { %v429_v51 = vpop.f32.mrf.mxu1 }
 0x35c   :  { %v507_v53 = vrot.slane %v429_v51, 7 }
 0x35d   :  { %v981_v52 = vpop.f32.mrf.mxu1 }
 0x35e   :  { %v73_v52 = vld [vmem:[#allocation5 + $0x20] sm:$0x3] }
 0x35f   :  { %v356_v54 = vpop.f32.mrf.mxu0 }
 0x360   :  { %v509_v55 = vsel %vm508_vm4, %v507_v53, %v356_v54 }
 0x361   :  { %v976_v56 = vpop.f32.mrf.mxu0  ;;  %1002 = vmatmul.mubr.msk.f32.vlgmr.msra.gmra.mxu1 %vm104_vm1, %v509_v55 }
 0x362   :  { %1023 = vmatprep.mubr.msk.f32.mxu1 %vm1144_vm0, %v1143_v3  ;;  %1016 = vmatpush3.msra.mxu1 %v63_v18 }
 0x363   :  { %1017 = vmatprep.subr.mxu1 %v1143_v3 }
 0x364   :  { %1018 = vmatpush3.msra.mxu1 %v62_v19 }
 0x365   :  { %1019 = vmatprep.subr.mxu1 %v1143_v3 }
 0x366   :  { %1020 = vmatpush3.msra.mxu1 %v61_v20 }
 0x367   :  { %v501_v57 = vpop.f32.mrf.mxu0  ;;  %1021 = vmatprep.subr.mxu1 %v1143_v3 }
 0x368   :  { %1022 = vmatpush3.msra.mxu1 %v60_v21 }
 0x369   :  { %v992_v58 = vpop.f32.mrf.mxu0 }
 0x421   :  { %v578_v60 = vpop.f32.mrf.mxu1 }
 0x422   :  { %v579_v61 = vadd.f32 %v578_v60, %v501_v57 }
 0x423   :  { %v1003_v62 = vpop.f32.mrf.mxu1 }
 0x424   :  { %v582_v63 = vadd.f32 %v579_v61, %v58_v59 }
 0x426   :  { %v922_v0 = vmul.f32 -1.442695, %v582_v63 }
 0x428   :  { %1056 = vpow2.f32 %v922_v0 }
 0x435   :  { %v1057_v1 = vpop.eup %1056 }
 0x436   :  { %v586_v2 = vadd.f32 1.0, %v1057_v1 }
 0x438   :  { %1058 = vrcp.f32 %v586_v2 }
 0x445   :  { %v1059_v8 = vpop.eup %1058 }
 0x446   :  { %v589_v10 = vmul.f32 2.0, %v1059_v8 }
 0x448   :  { %v923_v11 = vadd.f32 -1.0, %v589_v10 }
 0x44a   :  { %596 = vrot.lane.b32.xlu1 %v923_v11, %s1146_s1 }
 0x44e   :  { %591 = vrot.lane.b32.xlu1 %v1194_v7, %s1145_s0 }
 0x4bc   :  { %v597_v12 = vpop.permute.xlu1 %596 }
 0x4bd   :  { %v599_v13 = vmul.f32 %v1059_v8, %v597_v12 }
 0x4bf   :  { %601 = vrot.lane.b32.xlu1 %v599_v13, %s1147_s9 }
 0x4c0   :  { %v592_v14 = vpop.permute.xlu1 %591 }
 0x4c1   :  { %1013 = vmatmul.mubr.msk.f32.vlgmr.msra.gmra.mxu0 %vm104_vm1, %v592_v14  ;;  %v594_v15 = vmul.f32 %v1059_v8, %v592_v14 }
 0x4c2   :  { %1034 = vmatprep.mubr.msk.f32.mxu0 %vm1144_vm0, %v1143_v3  ;;  %1027 = vmatpush3.msra.mxu0 %v72_v45 }
 0x4c3   :  { %1028 = vmatprep.subr.mxu0 %v1143_v3 }
 0x4c4   :  { %1029 = vmatpush3.msra.mxu0 %v71_v46 }
 0x4c5   :  { %1030 = vmatprep.subr.mxu0 %v1143_v3 }
 0x4c6   :  { %1031 = vmatpush3.msra.mxu0 %v70_v47 }
 0x4c7   :  { %1032 = vmatprep.subr.mxu0 %v1143_v3 }
 0x4c8   :  { %1033 = vmatpush3.msra.mxu0 %v69_v48 }
 0x531   :  { %v602_v16 = vpop.permute.xlu1 %601 }
 0x532   :  { %v1251_v17 = vadd.f32 %v602_v16, %v594_v15 }
 0x534   :  { %1060 = vtanh.f32 %v1251_v17 }
 0x541   :  { %v1061_v22 = vpop.eup %1060 }
 0x542   :  { %607 = vrot.lane.b32.xlu1 %v1061_v22, %s1146_s1 }
 0x581   :  { %v679_v23 = vpop.f32.mrf.mxu0 }
 0x583   :  { %v1014_v24 = vpop.f32.mrf.mxu0 }
 0x5b4   :  { %v608_v25 = vpop.permute.xlu1 %607 }
 0x5b5   :  { %v610_v26 = vmul.f32 %v1059_v8, %v608_v25 }
 0x5b7   :  { %684 = vrot.lane.b32.xlu0 %v610_v26, %s1147_s9 }
 0x629   :  { %v1259_v27 = vpop.permute.xlu0 %684 }
 0x62a   :  { %1024 = vmatmul.mubr.msk.f32.vlgmr.msra.gmra.mxu1 %vm104_vm1, %v1259_v27 }
 0x6ea   :  { %v754_v29 = vpop.f32.mrf.mxu1 }
 0x6eb   :  { %v755_v30 = vadd.f32 %v754_v29, %v679_v23 }
 0x6ec   :  { %v1025_v31 = vpop.f32.mrf.mxu1 }
 0x6ed   :  { %v758_v32 = vadd.f32 %v755_v30, %v68_v28 }
 0x6ef   :  { %v926_v33 = vmul.f32 -1.442695, %v758_v32 }
 0x6f1   :  { %1062 = vpow2.f32 %v926_v33 }
 0x6fe   :  { %v1063_v34 = vpop.eup %1062 }
 0x6ff   :  { %v762_v35 = vadd.f32 1.0, %v1063_v34 }
 0x701   :  { %1064 = vrcp.f32 %v762_v35 }
 0x70e   :  { %v1065_v36 = vpop.eup %1064 }
 0x70f   :  { %v765_v37 = vmul.f32 2.0, %v1065_v36 }
 0x711   :  { %v927_v38 = vadd.f32 -1.0, %v765_v37 }
 0x713   :  { %772 = vrot.lane.b32.xlu1 %v927_v38, %s1146_s1 }
 0x717   :  { %767 = vrot.lane.b32.xlu1 %v1194_v7, %s1146_s1 }
 0x785   :  { %v773_v39 = vpop.permute.xlu1 %772 }
 0x786   :  { %v775_v40 = vmul.f32 %v1065_v36, %v773_v39 }
 0x788   :  { %777 = vrot.lane.b32.xlu1 %v775_v40, %s1147_s9 }
 0x789   :  { %v768_v41 = vpop.permute.xlu1 %767 }
 0x78a   :  { %v770_v42 = vmul.f32 %v1065_v36, %v768_v41 }
 0x7fa   :  { %v778_v43 = vpop.permute.xlu1 %777 }
 0x7fb   :  { %v780_v44 = vadd.f32 %v778_v43, %v770_v42 }
 0x7fd   :  { %1066 = vtanh.f32 %v780_v44 }
 0x80a   :  { %v1067_v7 = vpop.eup %1066 }
 0x80b   :  { %783 = vrot.lane.b32.xlu1 %v1067_v7, %s1146_s1 }
 0x87d   :  { %v784_v49 = vpop.permute.xlu1 %783 }
 0x87e   :  { %v786_v50 = vmul.f32 %v1065_v36, %v784_v49 }
 0x880   :  { %805 = vrot.lane.b32.xlu1 %v786_v50, %s1147_s9 }
 0x8f2   :  { %v806_v51 = vpop.permute.xlu1 %805 }
 0x8f3   :  { %1035 = vmatmul.mubr.msk.f32.vlgmr.msra.gmra.mxu0 %vm104_vm1, %v806_v51 }
 0x9b3   :  { %v875_v53 = vpop.f32.mrf.mxu0 }
 0x9b4   :  { %v876_v54 = vadd.f32 %v875_v53, %v73_v52 }
 0x9b5   :  { %v1036_v55 = vpop.f32.mrf.mxu0 }
 0x9b6   :  { %v880_v56 = vsel %vm879_vm5, %v876_v54, -inf }
 0x9b7   :  { %881 = vmax.xlane.f32.xlu0 %v880_v56 }
 0x9cd   :  { %789 = vrot.lane.b32.xlu0 %v786_v50, %s1146_s1 }
 0x9d1   :  { %797 = vrot.lane.b32.xlu0 %v780_v44, %s1146_s1 }
 0xa40   :  { %v882_v3 = vpop.xlane.xlu0 %881 }
 0xa41   :  { %v883_v57 = vsub.f32 %v876_v54, %v882_v3 }
 0xa43   :  { %v884_v58 = vmul.f32 1.442695, %v883_v57 }
 0xa44   :  { %v790_v61 = vpop.permute.xlu0 %789 }
 0xa45   :  { %1068 = vpow2.f32 %v884_v58  ;;  %v800_v63 = vsel %vm104_vm1, %v1259_v27, %v790_v61 }
 0xa48   :  { %v798_v1 = vpop.permute.xlu0 %797 }
 0xa52   :  { %v1069_v59 = vpop.eup %1068 }
 0xa53   :  { %v886_v60 = vsel %vm879_vm5, %v1069_v59, 0.0 }
 0xa54   :  { %887 = vadd.xlane.f32.xlu1 %v886_v60 }
 0xa65   :  { %793 = vrot.lane.b32.xlu1 %v1251_v17, %s1147_s9 }
 0xadd   :  { %v888_v62 = vpop.xlane.xlu1 %887 }
 0xade   :  { %1070 = vlog2.f32 %v888_v62 }
 0xae1   :  { %v794_v0 = vpop.permute.xlu1 %793 }
 0xae2   :  { %v802_v2 = vsel %vm801_vm6, %v800_v63, %v794_v0 }
 0xae3   :  { %v804_v4 = vsel %vm803_vm7, %v802_v2, %v798_v1 }
 0xae4   :  { %893 = vst [vmem:[%s1290_s5] sm:$0x3] %v804_v4 }
 0xaeb   :  { %v1071_v5 = vpop.eup %1070 }
 0xaec   :  { %v890_v6 = vmul.f32 0.6931472, %v1071_v5 }
 0xaee   :  { %v891_v8 = vsub.f32 %v883_v57, %v890_v6 }
 0xaf0   :  { %892 = vst [vmem:[#allocation7] sm:$0x3] %v891_v8 }
 0xaf1   :  { %1123 = shalt.err (!%p1120_p0)
}
 0xaf2   :  { %903 = dma.vmem_to_hbm [thread:$0]  %s901_s13, 32, %s1289_s4, [#allocation4]  }
 0xaf3   :  { %1136 = dma.done.wait [#allocation4], 32  }
 0xaf4   :  { %1137 = vsyncadd [#allocation4], 4294967264 }
 0xaf5   :  { %911 = vsyncpa [#allocation3], 1 }
 0xaf6   :  { %912 = vsyncpa [#allocation6], 1 }
 0xaf7   :  { %913 = vsyncpa [#allocation4], 1 }

</bundles_post_ra>
